<compile_context>
chip_gen: v7x
topology: tpu7x:2x2x1
jax: 0.10.0
libtpu: 0.0.40
codegen_flags: <defaults>
</compile_context>

<pallas_src>
import functools

import jax
import jax.numpy as jnp
from jax.experimental import pallas as pl
from jax.experimental.pallas import tpu as pltpu


def _round_up(a, b):
    return (a + b - 1) // b * b


def _largest_divisor_leq(n, bound):
    bound = max(1, min(n, int(bound)))
    for t in range(bound, 0, -1):
        if n % t == 0:
            return t
    return 1


def _physical_vmem_bytes():
    """Per-core VMEM capacity; conservative (v7x-sized) fallback if query fails."""
    try:
        info = pltpu.get_tpu_info()
        for attr in ("vmem_capacity_bytes", "vmem_bytes"):
            v = getattr(info, attr, None)
            if v:
                return int(v)
    except Exception:
        pass
    return 64 * 1024 * 1024


def _space_to_channel_kernel(x_ref, o_ref, *, dil, dc):
    # x_ref: (T, d, WDt, d*dc)   lane axis = (wn, ww, c) fused  (contiguous HBM read)
    # o_ref: (d, T, d, WDt, dc)  lane axis = (ww, c) fused
    # The only in-kernel work is peeling off each wn with a static lane slice.
    xb = x_ref[...]
    for wn in range(dil):
        o_ref[wn] = xb[..., wn * dc:(wn + 1) * dc]


def _space_to_channel_pallas(x_r, dilation, tile_hd=None, tile_wd=None,
                             min_grid_steps=16):
    """Core Pallas op on the channels-last factorized view.

    x_r:  (B, HD, d, d, WD, d*d*C)  indexed [b, hd, hn, hh, wd, wn*(d*C) + ww*C + c]
    out:  (B, d, d, HD, d, WD, d*C) indexed [b, hn, wn, hd, hh, wd, ww*C + c]
    """
    d = dilation
    B, HD, d1, d2, WD, D2C = x_r.shape
    assert d1 == d and d2 == d and D2C % (d * d) == 0
    DC = D2C // d

    itemsize = jnp.dtype(x_r.dtype).itemsize
    sub_mult = max(8, 32 // itemsize)      # dtype-aware sublane tiling
    lane_mult = 128

    phys_vmem = _physical_vmem_bytes()
    budget = min(3 * phys_vmem // 4, 96 * 1024 * 1024)
    target = min(budget // 6, 8 * 1024 * 1024)   # per-block target (double buffered)

    def per_hd_in(wdt):
        return d * _round_up(wdt, sub_mult) * _round_up(D2C, lane_mult) * itemsize

    def per_hd_out(wdt):
        return d * d * _round_up(wdt, sub_mult) * _round_up(DC, lane_mult) * itemsize

    def per_hd_max(wdt):
        return max(per_hd_in(wdt), per_hd_out(wdt))

    # WD-tiling fallback: only kicks in when a single hd-slice exceeds the target.
    if tile_wd is None:
        if per_hd_max(WD) <= target:
            tile_wd = WD
        else:
            cands = [t for t in range(sub_mult, WD, sub_mult) if WD % t == 0]
            good = [t for t in cands if per_hd_max(t) <= target]
            tile_wd = good[-1] if good else (cands[0] if cands else WD)
    assert WD % tile_wd == 0, "tile_wd must divide W // dilation**2"
    assert tile_wd == WD or tile_wd % sub_mult == 0, (
        "tile_wd must be a multiple of the sublane tiling or equal WD")
    WDt = tile_wd
    wtiles = WD // WDt

    if tile_hd is None:
        t_bytes = max(1, target // max(1, per_hd_max(WDt)))
        # Keep the grid at >= min_grid_steps steps where possible (2 TCs on v7x).
        denom = max(1, B * d * wtiles)
        needed = -(-min_grid_steps // denom)            # ceil division
        t_steps = HD if needed <= 1 else max(1, HD // needed)
        tile_hd = _largest_divisor_leq(HD, min(t_bytes, t_steps))
    assert HD % tile_hd == 0, "tile_hd must divide H // dilation**2"
    T = tile_hd

    in_block = T * per_hd_in(WDt)
    out_block = T * per_hd_out(WDt)
    need = 2 * (in_block + out_block) + (4 << 20)       # 2x double buffers + slack
    vmem_limit = int(min(phys_vmem, max(budget, need)))

    grid = (B, d, HD // T, wtiles)   # (b, hn, hd_tile, wd_tile) -- all independent

    kernel = functools.partial(_space_to_channel_kernel, dil=d, dc=DC)

    return pl.pallas_call(
        kernel,
        out_shape=jax.ShapeDtypeStruct((B, d, d, HD, d, WD, DC), x_r.dtype),
        grid=grid,
        in_specs=[
            pl.BlockSpec(
                (None, T, None, d, WDt, D2C),
                lambda b, hn, t, w: (b, t, hn, 0, w, 0),
            )
        ],
        out_specs=pl.BlockSpec(
            (None, None, d, T, d, WDt, DC),
            lambda b, hn, t, w: (b, hn, 0, t, 0, w, 0),
        ),
        compiler_params=pltpu.CompilerParams(
            dimension_semantics=("parallel", "parallel", "parallel", "parallel"),
            vmem_limit_bytes=vmem_limit,
        ),
        cost_estimate=pl.CostEstimate(
            flops=0,
            transcendentals=0,
            bytes_accessed=2 * x_r.size * itemsize,
        ),
    )(x_r)


def downsample(x, dilation, tile_hd=None, tile_wd=None):
    """NCHW Downsample: (B, C, H, W) -> (B, C*d*d, H//d, W//d)."""
    d = dilation
    B, C, H, W = x.shape
    assert H % (d * d) == 0 and W % (d * d) == 0, "H, W must be divisible by dilation**2"
    HD, WD = H // (d * d), W // (d * d)

    # Glue (XLA): NCHW -> channels-last factorized view; the trailing (wn, ww, c)
    # triple is fused into one lane-dense axis of size d*d*C so the kernel's
    # input DMA reads fully contiguous rows.
    x_r = jnp.transpose(x, (0, 2, 3, 1)).reshape(B, HD, d, d, WD, d * d * C)

    y = _space_to_channel_pallas(x_r, d, tile_hd=tile_hd, tile_wd=tile_wd)

    # Glue (XLA): (b, hn, wn, hd, hh, wd, ww, c) -> NCHW output.
    out = jnp.transpose(
        y.reshape(B, d, d, HD, d, WD, d, C), (0, 7, 1, 2, 3, 4, 5, 6)
    ).reshape(B, C * d * d, H // d, W // d)
    return out


def _reference_downsample(x, dilation):
    """Pure-jnp transcription of the three einops.rearrange calls."""
    d = dilation
    B, C, H, W = x.shape
    HD, WD = H // (d * d), W // (d * d)
    # 'b c (hd h) (wd w) -> b (c hd wd) h w', h=d*d, w=d*d
    x1 = (
        x.reshape(B, C, HD, d * d, WD, d * d)
        .transpose(0, 1, 2, 4, 3, 5)
        .reshape(B, C * HD * WD, d * d, d * d)
    )
    # 'b c (hn hh) (wn ww) -> b c (hn wn) hh ww', hh=d, ww=d
    x2 = (
        x1.reshape(B, C * HD * WD, d, d, d, d)
        .transpose(0, 1, 2, 4, 3, 5)
        .reshape(B, C * HD * WD, d * d, d, d)
    )
    # 'b (c hd wd) cc hh ww -> b (c cc) (hd hh) (wd ww)', hd=HD, wd=WD
    x3 = (
        x2.reshape(B, C, HD, WD, d * d, d, d)
        .transpose(0, 1, 4, 2, 5, 3, 6)
        .reshape(B, C * d * d, HD * d, WD * d)
    )
    return x3


if __name__ == "__main__":
    key = jax.random.PRNGKey(0)
    dilation = 2

    # Primary small test (module-consistent NCHW shape).
    B, C, H, W = 2, 4, 16, 16
    x = jax.random.normal(key, (B, C, H, W), dtype=jnp.float32)
    out = jax.block_until_ready(downsample(x, dilation))
    ref = _reference_downsample(x, dilation)
    assert out.shape == (B, C * dilation**2, H // dilation, W // dilation), out.shape
    assert jnp.array_equal(out, ref), "Pallas kernel does not match reference"

    # Exercise HD tiling (multiple hd-tile grid steps).
    x2 = jax.random.normal(jax.random.PRNGKey(0), (1, 8, 32, 32), dtype=jnp.float32)
    out2 = jax.block_until_ready(downsample(x2, dilation, tile_hd=2))
    ref2 = _reference_downsample(x2, dilation)
    assert jnp.array_equal(out2, ref2), "Pallas kernel does not match reference (hd-tiled)"

    # Exercise the WD-tiling fallback path (plus automatic hd tiling).
    x3 = jax.random.normal(jax.random.PRNGKey(0), (1, 4, 32, 64), dtype=jnp.float32)
    out3 = jax.block_until_ready(downsample(x3, dilation, tile_wd=8))
    ref3 = _reference_downsample(x3, dilation)
    assert jnp.array_equal(out3, ref3), "Pallas kernel does not match reference (wd-tiled)"

    print("KERNEL_OK")
</pallas_src>

<mosaic_0001>
module attributes {stable_mosaic.version = 11 : i64} {
  func.func @_space_to_channel_kernel(%arg0: i32, %arg1: i32, %arg2: i32, %arg3: i32, %arg4: memref<1x1x1x2x4x16xf32, #tpu.memory_space<vmem>>, %arg5: memref<1x1x2x1x2x4x8xf32, #tpu.memory_space<vmem>>) attributes {dimension_semantics = [#tpu.dimension_semantics<parallel>, #tpu.dimension_semantics<parallel>, #tpu.dimension_semantics<parallel>, #tpu.dimension_semantics<parallel>], iteration_bounds = array<i64: 2, 2, 4, 1>, scalar_prefetch = 0 : i64, scratch_operands = 0 : i64, tpu.core_type = #tpu.core_type<tc>, window_params = [{transform_indices = @transform_0, window_bounds = array<i64: 1, 1, 1, 2, 4, 16>}, {transform_indices = @transform_1, window_bounds = array<i64: 1, 1, 2, 1, 2, 4, 8>}]} {
    %c0 = arith.constant 0 : index
    %c0_0 = arith.constant 0 : index
    %c0_1 = arith.constant 0 : index
    %c0_2 = arith.constant 0 : index
    %c0_3 = arith.constant 0 : index
    %c0_4 = arith.constant 0 : index
    %0 = vector.load %arg4[%c0, %c0_0, %c0_1, %c0_2, %c0_3, %c0_4] : memref<1x1x1x2x4x16xf32, #tpu.memory_space<vmem>>, vector<1x1x1x2x4x16xf32>
    %1 = vector.shape_cast %0 : vector<1x1x1x2x4x16xf32> to vector<1x2x4x16xf32>
    %2 = vector.extract_strided_slice %1 {offsets = [0, 0, 0, 0], sizes = [1, 2, 4, 8], strides = [1, 1, 1, 1]} : vector<1x2x4x16xf32> to vector<1x2x4x8xf32>
    %c0_5 = arith.constant 0 : index
    %c0_6 = arith.constant 0 : index
    %c0_7 = arith.constant 0 : index
    %c0_8 = arith.constant 0 : index
    %c0_9 = arith.constant 0 : index
    %c0_10 = arith.constant 0 : index
    %c0_11 = arith.constant 0 : index
    %3 = vector.load %arg5[%c0_5, %c0_6, %c0_7, %c0_8, %c0_9, %c0_10, %c0_11] : memref<1x1x2x1x2x4x8xf32, #tpu.memory_space<vmem>>, vector<1x1x1x1x2x4x8xf32>
    %4 = vector.shape_cast %3 : vector<1x1x1x1x2x4x8xf32> to vector<1x2x4x8xf32>
    %5 = vector.shape_cast %2 : vector<1x2x4x8xf32> to vector<1x1x1x1x2x4x8xf32>
    tpu.vector_store %arg5[%c0_5, %c0_6, %c0_7, %c0_8, %c0_9, %c0_10, %c0_11], %5 {strides = array<i32>} : memref<1x1x2x1x2x4x8xf32, #tpu.memory_space<vmem>>, vector<1x1x1x1x2x4x8xf32>,
    %6 = vector.extract_strided_slice %1 {offsets = [0, 0, 0, 8], sizes = [1, 2, 4, 8], strides = [1, 1, 1, 1]} : vector<1x2x4x16xf32> to vector<1x2x4x8xf32>
    %c0_12 = arith.constant 0 : index
    %c0_13 = arith.constant 0 : index
    %c1 = arith.constant 1 : index
    %c0_14 = arith.constant 0 : index
    %c0_15 = arith.constant 0 : index
    %c0_16 = arith.constant 0 : index
    %c0_17 = arith.constant 0 : index
    %7 = vector.load %arg5[%c0_12, %c0_13, %c1, %c0_14, %c0_15, %c0_16, %c0_17] : memref<1x1x2x1x2x4x8xf32, #tpu.memory_space<vmem>>, vector<1x1x1x1x2x4x8xf32>
    %8 = vector.shape_cast %7 : vector<1x1x1x1x2x4x8xf32> to vector<1x2x4x8xf32>
    %9 = vector.shape_cast %6 : vector<1x2x4x8xf32> to vector<1x1x1x1x2x4x8xf32>
    tpu.vector_store %arg5[%c0_12, %c0_13, %c1, %c0_14, %c0_15, %c0_16, %c0_17], %9 {strides = array<i32>} : memref<1x1x2x1x2x4x8xf32, #tpu.memory_space<vmem>>, vector<1x1x1x1x2x4x8xf32>,
    return
  }
  func.func @transform_0(%arg0: i32, %arg1: i32, %arg2: i32, %arg3: i32) -> (i32, i32, i32, i32, i32, i32) {
    %c0_i32 = arith.constant 0 : i32
    %c0_i32_0 = arith.constant 0 : i32
    %c0_i32_1 = arith.constant 0 : i32
    return %arg0, %arg2, %arg1, %c0_i32, %arg3, %c0_i32_0 : i32, i32, i32, i32, i32, i32
  }
  func.func @transform_1(%arg0: i32, %arg1: i32, %arg2: i32, %arg3: i32) -> (i32, i32, i32, i32, i32, i32, i32) {
    %c0_i32 = arith.constant 0 : i32
    %c0_i32_0 = arith.constant 0 : i32
    %c0_i32_1 = arith.constant 0 : i32
    %c0_i32_2 = arith.constant 0 : i32
    return %arg0, %arg1, %c0_i32, %arg2, %c0_i32_0, %arg3, %c0_i32_1 : i32, i32, i32, i32, i32, i32, i32
  }
}

</mosaic_0001>

<bundles_post_ra>
// kernel: tpu_custom_call.1
= control target key start
LH: loop header
LB: loop body
LE: loop exit
PB: predicated region body
PF: predicated region fallthrough
CT: control target
= control target key end

     0   :  { %s907_s0 = inlined_call_operand.hbm [shape: f32[2,4,2,2,4,16], index: 0, kind: input, shape index: {}]   ;;  %s908_s1 = inlined_call_operand.hbm [shape: f32[2,2,2,4,2,4,8], index: 1, kind: output, shape index: {}]  }
   0x1   :  { %915 = sst [smem:[#allocation15_spill]] %s908_s1 }
   0x2   :  { %6 = vsyncpa [#allocation3], 0 }
   0x3   :  { %8 = vsyncpa [#allocation3 + $0x1], 0 }
   0x4   :  { %9 = vsyncpa [#allocation4], 0 }
   0x5   :  { %11 = vsyncpa [#allocation4 + $0x1], 0  ;;  %s665_s6 = smov 0   ;;  %s667_s7 = smov 0  }
   0x6   :  { %s669_s8 = smov 0   ;;  %s671_s9 = smov 0  }
   0x7   :  { %s673_s10 = smov 0   ;;  %s675_s11 = smov 0  }
   0x8   :  { %s677_s12 = smov 0   ;;  %s679_s13 = smov 0  }
   0x9   :  { %s681_s14 = smov 0   ;;  %s683_s15 = smov 0  }
   0xa   :  { %s685_s16 = smov 0   ;;  %s687_s17 = smov 0  }
   0xb   :  { %s689_s18 = smov 0  }
   0xc LB: > { %916 = sst [smem:[#allocation10_spill]] %s594_s6  ;;  %s347_s19 = sadd.s32 4294967295, %s642_s18   ;;  %s642_s18 = sphi %s689_s18, %s17_s18   ;;  %s638_s17 = sphi %s687_s17, %s944_s17   ;;  %s634_s16 = sphi %s685_s16, %s933_s16   ;;  %s630_s15 = sphi %s683_s15, %s943_s15   ;;  %s626_s14 = sphi %s681_s14, %s942_s14   ;;  %s622_s13 = sphi %s679_s13, %s931_s13   ;;  %s618_s12 = sphi %s677_s12, %s941_s12   ;;  %s614_s11 = sphi %s675_s11, %s940_s11   ;;  %s610_s10 = sphi %s673_s10, %s939_s10   ;;  %s606_s9 = sphi %s671_s9, %s938_s9   ;;  %s602_s8 = sphi %s669_s8, %s937_s8   ;;  %s598_s7 = sphi %s667_s7, %s936_s7   ;;  %s594_s6 = sphi %s665_s6, %s935_s6  }
   0xd   : > { %917 = sst [smem:[#allocation11_spill]] %s634_s16  ;;  %s348_s20 = sadd.s32 4294967294, %s642_s18  }
   0xe   : > { %s35_s21 = sadd.s32 1, %s630_s15  ;;  %s39_s22 = sadd.s32 1, %s634_s16 }
   0xf   : > { %p37_p0 = scmp.ge.s32.totalorder %s35_s21, 4  ;;  %s43_s23 = sadd.s32 1, %s638_s17 }
  0x10   : > { %s56_s24 = sadd.s32 1, %s614_s11  ;;  %p63_p1 = scmp.ne.s32.totalorder %s614_s11, %s610_s10 }
  0x11   : > { %s946_s21 = smov (%p37_p0, %s35_s21), 0  ;;  %s948_s22 = smov (!%p37_p0, %s39_s22), %s634_s16 }
  0x12   : > { %918 = sst [smem:[#allocation12_spill]] %s946_s21  ;;  %s48_s25 = ssub.s32 %s630_s15, %s946_s21 }
  0x13   : > { %p64_p2 = scmp.eq.s32.totalorder %s642_s18, 0  ;;  %p41_p3 = scmp.ge.s32.totalorder %s948_s22, 2 }
  0x14   : > { %p69_p4 = scmp.ne.s32.totalorder %s610_s10, %s606_s9  ;;  %p70_p6 = scmp.eq.s32.totalorder %s347_s19, 0 }
  0x15   : > { %p746_p5 = por %p64_p2, %p63_p1  ;;  %s950_s22 = smov (%p41_p3, %s948_s22), 0 }
  0x16   : > { %920 = sst [smem:[#allocation13_spill]] %s950_s22  ;;  %s952_s23 = smov (!%p41_p3, %s43_s23), %s638_s17 }
  0x17   : > { %s50_s27 = ssub.s32 %s634_s16, %s950_s22  ;;  %p755_p7 = por %p70_p6, %p69_p4 }
  0x18   : > { %p45_p8 = scmp.ge.s32.totalorder %s952_s23, 2  ;;  %s88_s29 = sadd.s32 1, %s602_s8 }
  0x19   : > { %p98_p9 = scmp.ne.s32.totalorder %s602_s8, %s598_s7  ;;  %p99_p10 = scmp.eq.s32.totalorder %s347_s19, 15 }
  0x1a   : > { %s954_s23 = smov (%p45_p8, %s952_s23), 0  ;;  %p104_p12 = scmp.ne.s32.totalorder %s598_s7, %s594_s6 }
  0x1b   : > { %922 = sst [smem:[#allocation14_spill]] %s954_s23  ;;  %p764_p11 = por %p99_p10, %p98_p9 }
  0x1c   : > { %s47_s2 = ssub.s32 %s638_s17, %s954_s23  ;;  %p105_p13 = scmp.eq.s32.totalorder %s348_s20, 15 }
  0x1d   : > { %s923_s30 = scalar_select %p764_p11, 1, 0 }
  0x1e   : > { %s49_s3 = sor.u32 %s48_s25, %s47_s2  ;;  %s81_s4 = sor.u32 %s50_s27, %s47_s2 }
  0x1f   : > { %s51_s5 = sor.u32 %s50_s27, %s49_s3  ;;  %s83_s9 = sor.u32 %s81_s4, %s48_s25 }
  0x20   : > { %p54_p0 = scmp.eq.s32.totalorder %s51_s5, 0  ;;  %p86_p1 = scmp.eq.s32.totalorder %s83_s9, 0 }
  0x21   : > { %p772_p2 = por %p105_p13, %p104_p12  ;;  %p386_p3 = scmp.lt.s32.totalorder %s642_s18, 16 }
  0x22   : > { %s779_s22 = scalar_select %p54_p0, %s614_s11, %s56_s24  }
  0x23   : > { %s924_s19 = scalar_select %p772_p2, 1, 0 }
  0x24   : > { %s782_s21 = scalar_select %p86_p1, %s602_s8, %s88_s29  }
  0x25   : > { %s125_s23 = sand.u32 1, %s614_s11   ;;  %s352_s20 = sshll.u32 %s634_s16, 1 }
  0x26   : > { %s351_s6 = sshll.u32 %s125_s23, 3  ;;  %s353_s1 = sshll.u32 %s630_s15, 2 }
  0x27   : > { %s354_s2 = sshll.u32 %s638_s17, 4  ;;  %s136_s27 = sadd.s32 %s353_s1, %s352_s20 }
  0x28   : > { %s129_s25 = scalar_lea.vmem [#allocation2], %s351_s6  ;;  %s138_s4 = sadd.s32 %s354_s2, %s136_s27 }
  0x29   : > { %s141_s3 = sshll.u32 %s129_s25, 4  ;;  %s355_s5 = sshll.u32 %s138_s4, 6  ;;  %s789_s3 = int_to_ptr.vmem [resolvable:$true] %s141_s3 }
  0x2a   : > { %p793_p4 = pnand %p386_p3, %p746_p5  ;;  %s800_s16 = scalar_lea.hbm %s907_s0, %s355_s5 }
  0x2b   : > { %s802_s1 = scalar_lea.sflag [#allocation3], %s125_s23  ;;  %s502_s6 = scalar_lea.hbm %s800_s16, 128 }
  0x2c   : > { %p503_p6 = scmp.ne.s32.totalorder %s800_s16, %s502_s6  ;;  %p504_p5 = pneg %p793_p4 }
  0x2d   : > { %s507_s2 = scalar_lea.hbm %s907_s0, 2048  ;;  %p508_p10 = scmp.lt.u32.totalorder %s800_s16, %s907_s0 }
  0x2e   : > { %p505_p8 = pnand %p504_p5, %p503_p6  ;;  %p509_p12 = scmp.lt.u32.totalorder %s507_s2, %s502_s6 }
  0x2f   : > { %p511_p0 = scmp.lt.u32.totalorder %s502_s6, %s800_s16 }
  0x30   : > { %p506_p9 = pneg %p505_p8  ;;  %p510_p13 = por %p509_p12, %p508_p10 }
  0x32   : > { %p512_p1 = por %p511_p0, %p510_p13 }
  0x34   : > { %p513_p3 = pnand %p512_p1, %p506_p9 }
  0x36   : > { %516 = shalt.err (!%p513_p3)
}
  0x37   : > { %s517_s23 = scalar_lea.vmem %s789_s3, 128  ;;  %s644_s4 = smov [#allocation2]  }
  0x38   : > { %p518_p6 = scmp.ne.s32.totalorder %s789_s3, %s517_s23  ;;  %s522_s5 = sshll.u32 %s644_s4, 4  ;;  %s523_s5 = int_to_ptr.vmem [resolvable:$false] %s522_s5 }
  0x39   : > { %s524_s24 = scalar_lea.vmem %s523_s5, 256  ;;  %p525_p11 = scmp.lt.s32.totalorder %s789_s3, %s523_s5 }
  0x3a   : > { %p520_p8 = pnand %p518_p6, %p504_p5  ;;  %p526_p10 = scmp.lt.s32.totalorder %s524_s24, %s517_s23 }
  0x3c   : > { %p521_p2 = pneg %p520_p8  ;;  %p527_p12 = por %p526_p10, %p525_p11 }
  0x3e   : > { %p528_p13 = pnand %p527_p12, %p521_p2 }
  0x40   : > { %531 = shalt.err (!%p528_p13)
}
  0x41   : > { %s645_s29 = smov 64   ;;  %s646_s6 = smov 4  }
  0x42   : > { %381 = dma.hbm_to_vmem [thread:$0]  (!%p793_p4), %s800_s16, 128, %s789_s3, %s802_s1, %s645_s29, %s645_s29, %s646_s6  }
  0x43   : > { %p356_p5 = scmp.ge.s32.totalorder %s642_s18, 1  ;;  %p149_p9 = scmp.lt.s32.totalorder %s642_s18, 17 }
  0x45   : > { %p150_p0 = pnand %p356_p5, %p149_p9 }
  0x46   : > { %s155_s26 = sand.u32 (!%p150_p0), 1, %s610_s10  }
  0x47   : > { %153 = sbr.rel (%p150_p0) target bundleno = 213 (0xd5), region = 24  ;;  %s357_s20 = sshll.u32 (!%p150_p0), %s155_s26, 3 }
  0x48   : > { %s156_s2 = scalar_lea.sflag (!%p150_p0), [#allocation3], %s155_s26  ;;  %s159_s27 = scalar_lea.vmem (!%p150_p0), [#allocation2], %s357_s20 }
  0x4e   : > { %585 = dma.done.wait (%p755_p7), %s156_s2, 128  }
  0x4f   : > { %587 = vsyncadd (%p755_p7), %s156_s2, 4294967168  ;;  %s175_s25 = sand.u32 1, %s598_s7   ;;  %v178_v0 = vld [vmem:[%s159_s27] sm:$0xf]  ;;  %vm180_vm0 = vcmask 60416   ;;  %s647_s16 = smov 120  }
  0x50   : > { %s358_s23 = sshll.u32 %s175_s25, 4  ;;  %v179_v1 = vld [vmem:[%s159_s27 + $0x4] sm:$0xf]  ;;  %185 = vrot.lane.b32.xlu0 %v178_v0, %s647_s16  ;;  %s195_s9 = scalar_lea.sflag [#allocation4], %s175_s25 }
  0x51   : > { %s177_s3 = scalar_lea.vmem [#allocation5], %s358_s23 }
  0x52   : > { %181 = vst.msk [vmem:[%s177_s3] sm:$0xf] %vm180_vm0, %v178_v0  ;;  %182 = vst.msk [vmem:[%s177_s3 + $0x4] sm:$0xf] %vm180_vm0, %v179_v1 }
  0x54   : > { %187 = vrot.lane.b32.xlu0 %v179_v1, %s647_s16 }
  0xc2   : > { %v186_v2 = vpop.permute.xlu0 %185 }
  0xc3   : > { %359 = vst.msk [vmem:[%s177_s3 + $0x8] sm:$0xf] %vm180_vm0, %v186_v2 }
  0xc6   : > { %v188_v3 = vpop.permute.xlu0 %187 }
  0xc7   : > { %360 = vst.msk [vmem:[%s177_s3 + $0xc] sm:$0xf] %vm180_vm0, %v188_v3 }
  0xc8   : > { %s362_s28 = sshll.u32 %s618_s12, 1  ;;  %s363_s1 = sshll.u32 %s622_s13, 4 }
  0xc9   : > { %s208_s4 = sadd.s32 %s363_s1, %s362_s28  ;;  %s364_s5 = sshll.u32 %s626_s14, 5 }
  0xca   : > { %s210_s24 = sadd.s32 %s364_s5, %s208_s4  ;;  %s229_s29 = sshll.u32 %s177_s3, 4  ;;  %s230_s29 = int_to_ptr.vmem [resolvable:$true] %s229_s29 }
  0xcb   : > { %s365_s6 = sshll.u32 %s210_s24, 6  ;;  %s926_s2 = sld [smem:[#allocation15_spill]] }
  0xcc   : > { %s648_s25 = smov 128   ;;  %p927_p7 = scmp.ne.s32.totalorder %s923_s30, 0 }
  0xcd   : > { %s649_s23 = smov 512   ;;  %s650_s12 = smov 2  }
  0xce   : > { %370 = sst [smem:[#allocation7]] (%p927_p7), %s648_s25  ;;  %s651_s13 = smov 64  }
  0xcf   : > { %371 = sst [smem:[#allocation7 + $0x1]] (%p927_p7), %s649_s23  ;;  %s652_s14 = smov 4  }
  0xd0   : > { %372 = sst [smem:[#allocation7 + $0x2]] (%p927_p7), %s650_s12  ;;  %s653_s16 = smov [#allocation6]  }
  0xd1   : > { %s212_s27 = scalar_lea.hbm %s926_s2, %s365_s6  ;;  %373 = sst [smem:[#allocation7 + $0x3]] (%p927_p7), %s651_s13 }
  0xd2   : > { %374 = sst [smem:[#allocation7 + $0x4]] (%p927_p7), %s651_s13  ;;  %s654_s3 = smov 0  }
  0xd3   : > { %375 = sst [smem:[#allocation7 + $0x5]] (%p927_p7), %s652_s14 }
  0xd4   : > { %376 = dma.general (%p927_p7), %s230_s29, 256, %s212_s27, %s195_s9, %s653_s16, [#allocation7], %s654_s3, 0  }
  0xd5 PF: > { %s928_s28 = sld [smem:[#allocation10_spill]]  ;;  %p387_p11 = scmp.ge.s32.totalorder %s642_s18, 2 }
  0xd6   : > { %p929_p2 = scmp.ne.s32.totalorder %s924_s19, 0 }
  0xd8   : > { %p383_p4 = pnand %p387_p11, %p929_p2 }
  0xdb   : > { %s257_s1 = sand.u32 1, %s928_s28  }
  0xdc   : > { %s258_s4 = scalar_lea.sflag [#allocation4], %s257_s1 }
  0xdd   : > { %589 = dma.done.wait (!%p383_p4), %s258_s4, 256  }
  0xde   : > { %591 = vsyncadd (!%p383_p4), %s258_s4, 4294967040  ;;  %s17_s18 = sadd.s32 1, %s642_s18   ;;  %s931_s13 = sld [smem:[#allocation11_spill]] }
  0xdf   : > { %p863_p1 = scmp.ge.s32.totalorder %s17_s18, 18   ;;  %s932_s30 = sld [smem:[#allocation12_spill]] }
  0xe0   : > { %s933_s16 = sld [smem:[#allocation13_spill]]  ;;  %s934_s19 = sld [smem:[#allocation14_spill]] }
  0xe1   : > { %s935_s6 = smov %s598_s7  ;;  %s936_s7 = smov %s602_s8 }
  0xe2   : > { %s937_s8 = smov %s782_s21  ;;  %s938_s9 = smov %s610_s10 }
  0xe3   : > { %s939_s10 = smov %s614_s11  ;;  %s940_s11 = smov %s779_s22 }
  0xe4   : > { %s941_s12 = smov %s630_s15  ;;  %s942_s14 = smov %s638_s17 }
  0xe5   : > { %s943_s15 = smov %s932_s30  ;;  %16 = sbr.rel (!%p863_p1) target bundleno = 12 (0xc), region = 75 }
  0xe6   : > { %s944_s17 = smov %s934_s19 }
  0xec   :  { %263 = vsyncpa [#allocation3], 1 }
  0xed   :  { %265 = vsyncpa [#allocation3 + $0x1], 1 }
  0xee   :  { %266 = vsyncpa [#allocation4], 1 }
  0xef   :  { %268 = vsyncpa [#allocation4 + $0x1], 1 }

</bundles_post_ra>
